<compile_context>
chip_gen: v5e
topology: v5e:2x2
jax: 0.10.0
libtpu: 0.0.40
codegen_flags: <defaults>
</compile_context>

<pallas_src>
import functools

import jax
import jax.numpy as jnp
from jax.experimental import pallas as pl
from jax.experimental.pallas import tpu as pltpu


def _mlp_kernel(xt_ref, w_ref, b_ref, o_ref, *, n_y):
    """Whole 4-layer MLP for one (D, tile_m) tile of observations.

    xt_ref : (D, tile_m) f32   -- zero-padded features; observations on lanes
    w_ref  : (4, D, D)   bf16  -- zero-padded transposed weights (out, in)
    b_ref  : (4, D, 1)   f32   -- zero-padded biases (broadcast along lanes)
    o_ref  : (tile_m, n_y) f32
    """
    x = xt_ref[...].astype(jnp.bfloat16)                       # (D, M)
    # Layer 1: Linear + ReLU (bias/ReLU on the f32 accumulator).
    h = jnp.dot(w_ref[0], x, preferred_element_type=jnp.float32)
    h = jnp.maximum(h + b_ref[0], 0.0)
    # Layer 2: Linear + ReLU
    h = jnp.dot(w_ref[1], h.astype(jnp.bfloat16),
                preferred_element_type=jnp.float32)
    h = jnp.maximum(h + b_ref[1], 0.0)
    # Layer 3: Linear + ReLU
    h = jnp.dot(w_ref[2], h.astype(jnp.bfloat16),
                preferred_element_type=jnp.float32)
    h = jnp.maximum(h + b_ref[2], 0.0)
    # Layer 4: Linear, no activation
    h = jnp.dot(w_ref[3], h.astype(jnp.bfloat16),
                preferred_element_type=jnp.float32)
    h = h + b_ref[3]                                           # (D, M) f32
    # In-kernel transpose (D is a multiple of 8 sublanes) + lane slice so the
    # wrapper never has to launch a separate XLA transpose kernel.
    o_ref[...] = h.T[:, :n_y].astype(o_ref.dtype)              # (M, n_y)


def pack_params(params):
    """Pack the 4 Linear layers into one bf16 weight slab and one f32 bias slab.

    Weights are stored transposed ((out, in)) and zero-padded to a common
    (D, D); zero padding composes exactly through the ReLU MLP (padded rows
    stay identically zero), so the kernel needs no per-layer shape logic.
    """
    w1, b1, w2, b2, w3, b3, w4, b4 = params            # w: (in, out), b: (1, out)
    ws, bs = [w1, w2, w3, w4], [b1, b2, b3, b4]
    dims = set()
    for w in ws:
        dims.update(w.shape)
    D = (-(-max(dims) // 8)) * 8                       # round up to 8 sublanes
    w_slab = jnp.stack([
        jnp.zeros((D, D), jnp.float32).at[:w.shape[1], :w.shape[0]].set(w.T)
        for w in ws]).astype(jnp.bfloat16)             # (4, D, D) bf16
    b_slab = jnp.stack([
        jnp.zeros((D, 1), jnp.float32).at[:b.shape[1], 0].set(b[0])
        for b in bs])                                  # (4, D, 1) f32
    n_y = ws[3].shape[1]
    return w_slab, b_slab, n_y


def _choose_tile_m(n_obs, max_tile_m):
    """Smallest 256-multiple covering n_obs, capped at max_tile_m.

    n_obs <= max_tile_m -> a single grid step (minimal fixed overhead on
    v5e/v6e's single TensorCore); larger n_obs -> >= 2 "parallel" steps, which
    lets v7x shard tiles across its two TensorCores.
    """
    return min(pl.cdiv(max(n_obs, 1), 256) * 256, max_tile_m)


@functools.partial(jax.jit, static_argnames=("n_y", "max_tile_m"))
def synthetic3layer_forward(X, w_slab, b_slab, *, n_y, max_tile_m=4096):
    """Batched forward pass. X: (n_obs, n_x) f32. Returns (n_obs, n_y) f32."""
    n_obs, n_x = X.shape
    D = w_slab.shape[-1]
    if n_obs == 0:
        return jnp.zeros((0, n_y), jnp.float32)

    tile_m = _choose_tile_m(n_obs, max_tile_m)
    n_pad = pl.cdiv(n_obs, tile_m) * tile_m

    # Single fused XLA copy: pad observations to n_pad, pad features to D, and
    # lay out feature-major (observations on the lane axis). Stays f32; the
    # kernel casts to bf16, avoiding an extra cast pass over X in HBM.
    xt = jnp.pad(X, ((0, n_pad - n_obs), (0, D - n_x))).T      # (D, n_pad) f32

    grid = (n_pad // tile_m,)

    out = pl.pallas_call(
        functools.partial(_mlp_kernel, n_y=n_y),
        out_shape=jax.ShapeDtypeStruct((n_pad, n_y), jnp.float32),
        grid_spec=pltpu.PrefetchScalarGridSpec(
            num_scalar_prefetch=0,
            grid=grid,
            in_specs=[
                pl.BlockSpec((D, tile_m), lambda i: (0, i)),     # X^T tile
                pl.BlockSpec(w_slab.shape, lambda i: (0, 0, 0)),  # resident
                pl.BlockSpec(b_slab.shape, lambda i: (0, 0, 0)),  # resident
            ],
            out_specs=pl.BlockSpec((tile_m, n_y), lambda i: (i, 0)),
        ),
        compiler_params=pltpu.CompilerParams(
            dimension_semantics=("parallel",),
            vmem_limit_bytes=32 * 1024 * 1024),
    )(xt, w_slab, b_slab)

    # Only a row slice; padded observations are dropped, no transpose needed.
    return out[:n_obs]


def init_params(key, n_x, n_y):
    """Deterministic init mirroring nn.Linear's U(-1/sqrt(fan_in), 1/sqrt(fan_in)).

    h1 = int(0.5*(n_x+n_y)), h2 = int(0.6*(n_x+n_y)); weights stored (in, out),
    biases (1, out), matching the PyTorch module's layer sizes.
    """
    h1 = int(0.5 * (n_x + n_y))
    h2 = int(0.6 * (n_x + n_y))
    dims = [(n_x, h1), (h1, h2), (h2, n_y), (n_y, n_y)]
    params = []
    for fan_in, fan_out in dims:
        key, kw, kb = jax.random.split(key, 3)
        bound = 1.0 / jnp.sqrt(fan_in)
        w = jax.random.uniform(kw, (fan_in, fan_out), jnp.float32, -bound, bound)
        b = jax.random.uniform(kb, (1, fan_out), jnp.float32, -bound, bound)
        params += [w, b]
    return tuple(params)


def reference_forward(X, params):
    """Pure-JAX reference of the PyTorch forward with the same bf16 rounding of
    matmul operands as the kernel (f32 accumulation, f32 bias/ReLU)."""
    w1, b1, w2, b2, w3, b3, w4, b4 = params
    bf = lambda a: a.astype(jnp.bfloat16).astype(jnp.float32)
    h = jnp.maximum(bf(X) @ bf(w1) + b1, 0.0)
    h = jnp.maximum(bf(h) @ bf(w2) + b2, 0.0)
    h = jnp.maximum(bf(h) @ bf(w3) + b3, 0.0)
    return bf(h) @ bf(w4) + b4


if __name__ == "__main__":
    # Small shapes consistent with the module: (n_obs x n_x) -> (n_obs x n_y).
    # n_obs is deliberately NOT a multiple of 256 to exercise the padding path.
    n_obs, n_x, n_y = 1000, 8, 4

    key = jax.random.PRNGKey(0)
    k_params, k_x = jax.random.split(key)
    params = init_params(k_params, n_x, n_y)
    X = jax.random.normal(k_x, (n_obs, n_x), dtype=jnp.float32)

    w_slab, b_slab, n_y_out = pack_params(params)
    out = synthetic3layer_forward(X, w_slab, b_slab, n_y=n_y_out)
    out = jax.block_until_ready(out)

    ref = reference_forward(X, params)
    assert out.shape == (n_obs, n_y)
    assert jnp.allclose(out, ref, atol=2e-2, rtol=2e-2), "mismatch vs reference"

    print("KERNEL_OK")
</pallas_src>

<mosaic_0001>
module attributes {stable_mosaic.version = 11 : i64} {
  func.func @_mlp_kernel(%arg0: i32, %arg1: memref<8x1024xf32, #tpu.memory_space<vmem>>, %arg2: memref<4x8x8xbf16, #tpu.memory_space<vmem>>, %arg3: memref<4x8x1xf32, #tpu.memory_space<vmem>>, %arg4: memref<1024x4xf32, #tpu.memory_space<vmem>>) attributes {dimension_semantics = [#tpu.dimension_semantics<parallel>], iteration_bounds = array<i64: 1>, scalar_prefetch = 0 : i64, scratch_operands = 0 : i64, tpu.core_type = #tpu.core_type<tc>, window_params = [{transform_indices = @transform_0, window_bounds = array<i64: 8, 1024>}, {pipeline_mode = #tpu.pipeline_mode<synchronous>, transform_indices = @transform_1, window_bounds = array<i64: 4, 8, 8>}, {pipeline_mode = #tpu.pipeline_mode<synchronous>, transform_indices = @transform_2, window_bounds = array<i64: 4, 8, 1>}, {transform_indices = @transform_3, window_bounds = array<i64: 1024, 4>}]} {
    %c0 = arith.constant 0 : index
    %c0_0 = arith.constant 0 : index
    %0 = vector.load %arg1[%c0, %c0_0] : memref<8x1024xf32, #tpu.memory_space<vmem>>, vector<8x1024xf32>
    %1 = arith.truncf %0 : vector<8x1024xf32> to vector<8x1024xbf16>
    %c0_1 = arith.constant 0 : index
    %c0_2 = arith.constant 0 : index
    %c0_3 = arith.constant 0 : index
    %2 = vector.load %arg2[%c0_1, %c0_2, %c0_3] : memref<4x8x8xbf16, #tpu.memory_space<vmem>>, vector<1x8x8xbf16>
    %3 = vector.shape_cast %2 : vector<1x8x8xbf16> to vector<8x8xbf16>
    %cst = arith.constant dense<0.000000e+00> : vector<8x1024xf32>
    %4 = tpu.matmul %3, %1, %cst {dimension_numbers = #tpu.dot_dimension_numbers<[1], [0], [0], [1], [0, 0, 1, 1], [], []>} : vector<8x8xbf16>, vector<8x1024xbf16>, vector<8x1024xf32> -> vector<8x1024xf32>
    %c0_4 = arith.constant 0 : index
    %c0_5 = arith.constant 0 : index
    %c0_6 = arith.constant 0 : index
    %5 = vector.load %arg3[%c0_4, %c0_5, %c0_6] : memref<4x8x1xf32, #tpu.memory_space<vmem>>, vector<1x8x1xf32>
    %6 = vector.shape_cast %5 : vector<1x8x1xf32> to vector<8x1xf32>
    %7 = vector.broadcast %6 : vector<8x1xf32> to vector<8x1024xf32>
    %8 = arith.addf %4, %7 : vector<8x1024xf32>
    %cst_7 = arith.constant 0.000000e+00 : f32
    %9 = vector.broadcast %cst_7 : f32 to vector<8x1024xf32>
    %10 = arith.maximumf %8, %9 : vector<8x1024xf32>
    %c1 = arith.constant 1 : index
    %c0_8 = arith.constant 0 : index
    %c0_9 = arith.constant 0 : index
    %11 = vector.load %arg2[%c1, %c0_8, %c0_9] : memref<4x8x8xbf16, #tpu.memory_space<vmem>>, vector<1x8x8xbf16>
    %12 = vector.shape_cast %11 : vector<1x8x8xbf16> to vector<8x8xbf16>
    %13 = arith.truncf %10 : vector<8x1024xf32> to vector<8x1024xbf16>
    %cst_10 = arith.constant dense<0.000000e+00> : vector<8x1024xf32>
    %14 = tpu.matmul %12, %13, %cst_10 {dimension_numbers = #tpu.dot_dimension_numbers<[1], [0], [0], [1], [0, 0, 1, 1], [], []>} : vector<8x8xbf16>, vector<8x1024xbf16>, vector<8x1024xf32> -> vector<8x1024xf32>
    %c1_11 = arith.constant 1 : index
    %c0_12 = arith.constant 0 : index
    %c0_13 = arith.constant 0 : index
    %15 = vector.load %arg3[%c1_11, %c0_12, %c0_13] : memref<4x8x1xf32, #tpu.memory_space<vmem>>, vector<1x8x1xf32>
    %16 = vector.shape_cast %15 : vector<1x8x1xf32> to vector<8x1xf32>
    %17 = vector.broadcast %16 : vector<8x1xf32> to vector<8x1024xf32>
    %18 = arith.addf %14, %17 : vector<8x1024xf32>
    %cst_14 = arith.constant 0.000000e+00 : f32
    %19 = vector.broadcast %cst_14 : f32 to vector<8x1024xf32>
    %20 = arith.maximumf %18, %19 : vector<8x1024xf32>
    %c2 = arith.constant 2 : index
    %c0_15 = arith.constant 0 : index
    %c0_16 = arith.constant 0 : index
    %21 = vector.load %arg2[%c2, %c0_15, %c0_16] : memref<4x8x8xbf16, #tpu.memory_space<vmem>>, vector<1x8x8xbf16>
    %22 = vector.shape_cast %21 : vector<1x8x8xbf16> to vector<8x8xbf16>
    %23 = arith.truncf %20 : vector<8x1024xf32> to vector<8x1024xbf16>
    %cst_17 = arith.constant dense<0.000000e+00> : vector<8x1024xf32>
    %24 = tpu.matmul %22, %23, %cst_17 {dimension_numbers = #tpu.dot_dimension_numbers<[1], [0], [0], [1], [0, 0, 1, 1], [], []>} : vector<8x8xbf16>, vector<8x1024xbf16>, vector<8x1024xf32> -> vector<8x1024xf32>
    %c2_18 = arith.constant 2 : index
    %c0_19 = arith.constant 0 : index
    %c0_20 = arith.constant 0 : index
    %25 = vector.load %arg3[%c2_18, %c0_19, %c0_20] : memref<4x8x1xf32, #tpu.memory_space<vmem>>, vector<1x8x1xf32>
    %26 = vector.shape_cast %25 : vector<1x8x1xf32> to vector<8x1xf32>
    %27 = vector.broadcast %26 : vector<8x1xf32> to vector<8x1024xf32>
    %28 = arith.addf %24, %27 : vector<8x1024xf32>
    %cst_21 = arith.constant 0.000000e+00 : f32
    %29 = vector.broadcast %cst_21 : f32 to vector<8x1024xf32>
    %30 = arith.maximumf %28, %29 : vector<8x1024xf32>
    %c3 = arith.constant 3 : index
    %c0_22 = arith.constant 0 : index
    %c0_23 = arith.constant 0 : index
    %31 = vector.load %arg2[%c3, %c0_22, %c0_23] : memref<4x8x8xbf16, #tpu.memory_space<vmem>>, vector<1x8x8xbf16>
    %32 = vector.shape_cast %31 : vector<1x8x8xbf16> to vector<8x8xbf16>
    %33 = arith.truncf %30 : vector<8x1024xf32> to vector<8x1024xbf16>
    %cst_24 = arith.constant dense<0.000000e+00> : vector<8x1024xf32>
    %34 = tpu.matmul %32, %33, %cst_24 {dimension_numbers = #tpu.dot_dimension_numbers<[1], [0], [0], [1], [0, 0, 1, 1], [], []>} : vector<8x8xbf16>, vector<8x1024xbf16>, vector<8x1024xf32> -> vector<8x1024xf32>
    %c3_25 = arith.constant 3 : index
    %c0_26 = arith.constant 0 : index
    %c0_27 = arith.constant 0 : index
    %35 = vector.load %arg3[%c3_25, %c0_26, %c0_27] : memref<4x8x1xf32, #tpu.memory_space<vmem>>, vector<1x8x1xf32>
    %36 = vector.shape_cast %35 : vector<1x8x1xf32> to vector<8x1xf32>
    %37 = vector.broadcast %36 : vector<8x1xf32> to vector<8x1024xf32>
    %38 = arith.addf %34, %37 : vector<8x1024xf32>
    %39 = tpu.transpose %38, [1, 0] : vector<8x1024xf32> -> vector<1024x8xf32>
    %40 = vector.extract_strided_slice %39 {offsets = [0, 0], sizes = [1024, 4], strides = [1, 1]} : vector<1024x8xf32> to vector<1024x4xf32>
    %c0_28 = arith.constant 0 : index
    %c0_29 = arith.constant 0 : index
    %41 = vector.load %arg4[%c0_28, %c0_29] : memref<1024x4xf32, #tpu.memory_space<vmem>>, vector<1024x4xf32>
    tpu.vector_store %arg4[%c0_28, %c0_29], %40 {strides = array<i32>} : memref<1024x4xf32, #tpu.memory_space<vmem>>, vector<1024x4xf32>,
    return
  }
  func.func @transform_0(%arg0: i32) -> (i32, i32) {
    %c0_i32 = arith.constant 0 : i32
    %c0_i32_0 = arith.constant 0 : i32
    return %c0_i32, %arg0 : i32, i32
  }
  func.func @transform_1(%arg0: i32) -> (i32, i32, i32) {
    %c0_i32 = arith.constant 0 : i32
    %c0_i32_0 = arith.constant 0 : i32
    %c0_i32_1 = arith.constant 0 : i32
    %c0_i32_2 = arith.constant 0 : i32
    return %c0_i32, %c0_i32_0, %c0_i32_1 : i32, i32, i32
  }
  func.func @transform_2(%arg0: i32) -> (i32, i32, i32) {
    %c0_i32 = arith.constant 0 : i32
    %c0_i32_0 = arith.constant 0 : i32
    %c0_i32_1 = arith.constant 0 : i32
    %c0_i32_2 = arith.constant 0 : i32
    return %c0_i32, %c0_i32_0, %c0_i32_1 : i32, i32, i32
  }
  func.func @transform_3(%arg0: i32) -> (i32, i32) {
    %c0_i32 = arith.constant 0 : i32
    %c0_i32_0 = arith.constant 0 : i32
    return %arg0, %c0_i32 : i32, i32
  }
}

</mosaic_0001>

<bundles_post_ra>
// kernel: synthetic3layer_forward.1
= control target key start
LH: loop header
LB: loop body
LE: loop exit
PB: predicated region body
PF: predicated region fallthrough
CT: control target
= control target key end

     0   :  { %vm42_vm0 = vcmask 1043456   ;;  %v1070_v3 = vmov 0   ;;  %vm38_vm1 = vcmask 64512   ;;  %vm895_vm2 = vcmask 31744   ;;  %s1728_s0 = inlined_call_operand.vmem [shape: f32[8,1024], index: 0, kind: input, shape index: {}]   ;;  %s1729_s2 = inlined_call_operand.vmem [shape: f32[4,8,1], index: 2, kind: input, shape index: {}]   ;;  %s1730_s1 = inlined_call_operand.vmem [shape: bf16[4,8,8], index: 1, kind: input, shape index: {}]   ;;  %s1731_s3 = inlined_call_operand.vmem [shape: f32[1024,4], index: 3, kind: output, shape index: {}]  }
   0x1   :  { %v15_v0 = vld [vmem:[%s1728_s0] sm:$0xff]  ;;  %v16_v1 = vld [vmem:[%s1728_s0 + $0x8] sm:$0xff]  ;;  %v17_v2 = vld [vmem:[%s1728_s0 + $0x10] sm:$0xff]  ;;  %1068 = vset.pattern.permute.xlu0 %v1070_v3  ;;  %1069 = vset.pattern.permute.xlu1 %v1070_v3 }
   0x2   :  { %v23_v4 = vpack.c.bf16 %v15_v0, %v15_v0  ;;  %v24_v5 = vpack.c.bf16 %v16_v1, %v16_v1  ;;  %v25_v6 = vpack.c.bf16 %v17_v2, %v17_v2  ;;  %v18_v7 = vld [vmem:[%s1728_s0 + $0x18] sm:$0xff]  ;;  %v32_v8 = vld [vmem:[%s1729_s2] sm:$0xff]  ;;  %v20_v11 = vld [vmem:[%s1728_s0 + $0x28] sm:$0xff] }
   0x3   :  { %v26_v9 = vpack.c.bf16 %v18_v7, %v18_v7  ;;  %35 = vperm.xlu0 %1068, %v32_v8   ;;  %v19_v10 = vld [vmem:[%s1728_s0 + $0x20] sm:$0xff]  ;;  %v21_v16 = vld [vmem:[%s1728_s0 + $0x30] sm:$0xff]  ;;  %v22_v17 = vld [vmem:[%s1728_s0 + $0x38] sm:$0xff]  ;;  %v28_v20 = vpack.c.bf16 %v20_v11, %v20_v11 }
   0x4   :  { %v44_v12 = vsel %vm42_vm0, %v23_v4, 0  ;;  %v47_v13 = vsel %vm42_vm0, %v24_v5, 0  ;;  %v50_v14 = vsel %vm42_vm0, %v25_v6, 0  ;;  %v27_v15 = vpack.c.bf16 %v19_v10, %v19_v10  ;;  %v31_v19 = vld [vmem:[%s1730_s1] sm:$0xf]  ;;  %v1037_v26 = vld [vmem:[%s1729_s2 + $0x8] sm:$0xff] }
   0x5   :  { %74 = vmatpush.bf16.msra.mxu0 %v44_v12  ;;  %87 = vmatpush.bf16.msra.mxu1 %v47_v13  ;;  %v53_v18 = vsel %vm42_vm0, %v26_v9, 0  ;;  %v29_v21 = vpack.c.bf16 %v21_v16, %v21_v16  ;;  %v30_v22 = vpack.c.bf16 %v22_v17, %v22_v17  ;;  %v59_v24 = vsel %vm42_vm0, %v28_v20, 0  ;;  %v1036_v45 = vld [vmem:[%s1730_s1 + $0x4] sm:$0xf] }
   0x6   :  { %100 = vmatpush.bf16.msra.mxu2 %v50_v14  ;;  %113 = vmatpush.bf16.msra.mxu3 %v53_v18  ;;  %v56_v23 = vsel %vm42_vm0, %v27_v15, 0  ;;  %v1047_v14 = vld [vmem:[%s1729_s2 + $0x10] sm:$0xff]  ;;  %v1057_v15 = vld [vmem:[%s1729_s2 + $0x18] sm:$0xff] }
   0x7   :  { %v62_v25 = vsel %vm42_vm0, %v29_v21, 0  ;;  %v65_v27 = vsel %vm42_vm0, %v30_v22, 0  ;;  %349 = vperm.xlu1 %1069, %v1047_v14  }
   0x8   :  { %1028 = vmatmul.msk.bf16.vlgmr.msra.gmra.mxu0 %vm38_vm1, %v31_v19  ;;  %1029 = vmatmul.msk.bf16.vlgmr.msra.gmra.mxu1 %vm38_vm1, %v31_v19 }
   0x9   :  { %126 = vmatpush.bf16.msrb.mxu0 %v56_v23  ;;  %1030 = vmatmul.msk.bf16.vlgmr.msra.gmra.mxu2 %vm38_vm1, %v31_v19 }
   0xa   :  { %1031 = vmatmul.msk.bf16.vlgmr.msra.gmra.mxu3 %vm38_vm1, %v31_v19  ;;  %139 = vmatpush.bf16.msrb.mxu1 %v59_v24 }
   0xb   :  { %152 = vmatpush.bf16.msrb.mxu2 %v62_v25  ;;  %193 = vperm.xlu0 %1068, %v1037_v26  }
   0xc   :  { %165 = vmatpush.bf16.msrb.mxu3 %v65_v27 }
   0xf   :  { %505 = vperm.xlu1 %1069, %v1057_v15   ;;  %v1056_v15 = vld [vmem:[%s1730_s1 + $0xc] sm:$0xf] }
  0x18   :  { %1032 = vmatmul.msk.bf16.vlgmr.msrb.gmra.mxu0 %vm38_vm1, %v31_v19  ;;  %1033 = vmatmul.msk.bf16.vlgmr.msrb.gmra.mxu1 %vm38_vm1, %v31_v19 }
  0x19   :  { %1034 = vmatmul.msk.bf16.vlgmr.msrb.gmra.mxu2 %vm38_vm1, %v31_v19 }
  0x1a   :  { %1035 = vmatmul.msk.bf16.vlgmr.msrb.gmra.mxu3 %vm38_vm1, %v31_v19 }
  0x75   :  { %v36_v28 = vpop.permute.xlu0 %35 }
  0x7d   :  { %v194_v16 = vpop.permute.xlu0 %193 }
  0x85   :  { %v76_v29 = vpop.f32.mrf.mxu0  ;;  %v89_v30 = vpop.f32.mrf.mxu1 }
  0x86   :  { %v77_v31 = vadd.f32 %v76_v29, %v36_v28  ;;  %v90_v32 = vadd.f32 %v89_v30, %v36_v28  ;;  %v1046_v29 = vld [vmem:[%s1730_s1 + $0x8] sm:$0xf] }
  0x88   :  { %v171_v33 = vmax.f32 %v77_v31, 0.0  ;;  %v172_v34 = vmax.f32 %v90_v32, 0.0 }
  0x8a   :  { %v181_v35 = vpack.c.bf16 %v171_v33, %v171_v33  ;;  %v182_v36 = vpack.c.bf16 %v172_v34, %v172_v34 }
  0x8c   :  { %v102_v37 = vpop.f32.mrf.mxu2  ;;  %v200_v39 = vsel %vm42_vm0, %v181_v35, 0  ;;  %v203_v40 = vsel %vm42_vm0, %v182_v36, 0 }
  0x8d   :  { %v115_v38 = vpop.f32.mrf.mxu3  ;;  %v103_v41 = vadd.f32 %v102_v37, %v36_v28  ;;  %v78_v43 = vpop.f32.mrf.mxu0  ;;  %230 = vmatpush.bf16.msra.mxu0 %v200_v39  ;;  %243 = vmatpush.bf16.msra.mxu1 %v203_v40 }
  0x8e   :  { %v116_v42 = vadd.f32 %v115_v38, %v36_v28  ;;  %v91_v44 = vpop.f32.mrf.mxu1 }
  0x8f   :  { %v173_v46 = vmax.f32 %v103_v41, 0.0 }
  0x90   :  { %v174_v47 = vmax.f32 %v116_v42, 0.0  ;;  %1038 = vmatmul.msk.bf16.vlgmr.msra.gmra.mxu0 %vm38_vm1, %v1036_v45  ;;  %1039 = vmatmul.msk.bf16.vlgmr.msra.gmra.mxu1 %vm38_vm1, %v1036_v45 }
  0x91   :  { %v183_v48 = vpack.c.bf16 %v173_v46, %v173_v46 }
  0x92   :  { %v184_v49 = vpack.c.bf16 %v174_v47, %v174_v47 }
  0x93   :  { %v206_v50 = vsel %vm42_vm0, %v183_v48, 0 }
  0x94   :  { %v209_v51 = vsel %vm42_vm0, %v184_v49, 0  ;;  %v104_v52 = vpop.f32.mrf.mxu2  ;;  %256 = vmatpush.bf16.msra.mxu2 %v206_v50 }
  0x95   :  { %v117_v53 = vpop.f32.mrf.mxu3  ;;  %269 = vmatpush.bf16.msra.mxu3 %v209_v51  ;;  %v128_v54 = vpop.f32.mrf.mxu0 }
  0x96   :  { %v141_v55 = vpop.f32.mrf.mxu1  ;;  %v129_v56 = vadd.f32 %v128_v54, %v36_v28 }
  0x97   :  { %v142_v57 = vadd.f32 %v141_v55, %v36_v28  ;;  %1040 = vmatmul.msk.bf16.vlgmr.msra.gmra.mxu2 %vm38_vm1, %v1036_v45 }
  0x98   :  { %1041 = vmatmul.msk.bf16.vlgmr.msra.gmra.mxu3 %vm38_vm1, %v1036_v45  ;;  %v175_v58 = vmax.f32 %v129_v56, 0.0 }
  0x99   :  { %v176_v59 = vmax.f32 %v142_v57, 0.0 }
  0x9a   :  { %v185_v60 = vpack.c.bf16 %v175_v58, %v175_v58 }
  0x9b   :  { %v186_v61 = vpack.c.bf16 %v176_v59, %v176_v59 }
  0x9c   :  { %v154_v62 = vpop.f32.mrf.mxu2  ;;  %v212_v0 = vsel %vm42_vm0, %v185_v60, 0 }
  0x9d   :  { %v167_v63 = vpop.f32.mrf.mxu3  ;;  %v215_v1 = vsel %vm42_vm0, %v186_v61, 0  ;;  %v155_v2 = vadd.f32 %v154_v62, %v36_v28  ;;  %v130_v4 = vpop.f32.mrf.mxu0  ;;  %282 = vmatpush.bf16.msrb.mxu0 %v212_v0 }
  0x9e   :  { %v168_v3 = vadd.f32 %v167_v63, %v36_v28  ;;  %295 = vmatpush.bf16.msrb.mxu1 %v215_v1  ;;  %v143_v5 = vpop.f32.mrf.mxu1 }
  0x9f   :  { %v177_v6 = vmax.f32 %v155_v2, 0.0  ;;  %v350_v2 = vpop.permute.xlu1 %349 }
  0xa0   :  { %v178_v7 = vmax.f32 %v168_v3, 0.0  ;;  %1042 = vmatmul.msk.bf16.vlgmr.msrb.gmra.mxu0 %vm38_vm1, %v1036_v45 }
  0xa1   :  { %1043 = vmatmul.msk.bf16.vlgmr.msrb.gmra.mxu1 %vm38_vm1, %v1036_v45  ;;  %v187_v8 = vpack.c.bf16 %v177_v6, %v177_v6 }
  0xa2   :  { %v188_v9 = vpack.c.bf16 %v178_v7, %v178_v7 }
  0xa3   :  { %v218_v10 = vsel %vm42_vm0, %v187_v8, 0 }
  0xa4   :  { %v221_v11 = vsel %vm42_vm0, %v188_v9, 0  ;;  %308 = vmatpush.bf16.msrb.mxu2 %v218_v10  ;;  %v156_v12 = vpop.f32.mrf.mxu2 }
  0xa5   :  { %321 = vmatpush.bf16.msrb.mxu3 %v221_v11  ;;  %v169_v13 = vpop.f32.mrf.mxu3 }
  0xa7   :  { %1044 = vmatmul.msk.bf16.vlgmr.msrb.gmra.mxu2 %vm38_vm1, %v1036_v45 }
  0xa8   :  { %1045 = vmatmul.msk.bf16.vlgmr.msrb.gmra.mxu3 %vm38_vm1, %v1036_v45 }
 0x10d   :  { %v232_v17 = vpop.f32.mrf.mxu0  ;;  %v245_v18 = vpop.f32.mrf.mxu1 }
 0x10e   :  { %v233_v19 = vadd.f32 %v232_v17, %v194_v16  ;;  %v246_v20 = vadd.f32 %v245_v18, %v194_v16 }
 0x110   :  { %v327_v21 = vmax.f32 %v233_v19, 0.0  ;;  %v328_v22 = vmax.f32 %v246_v20, 0.0 }
 0x112   :  { %v337_v23 = vpack.c.bf16 %v327_v21, %v327_v21  ;;  %v338_v24 = vpack.c.bf16 %v328_v22, %v328_v22 }
 0x114   :  { %v356_v25 = vsel %vm42_vm0, %v337_v23, 0  ;;  %v359_v26 = vsel %vm42_vm0, %v338_v24, 0 }
 0x115   :  { %v234_v27 = vpop.f32.mrf.mxu0  ;;  %v247_v28 = vpop.f32.mrf.mxu1  ;;  %386 = vmatpush.bf16.msra.mxu0 %v356_v25  ;;  %399 = vmatpush.bf16.msra.mxu1 %v359_v26 }
 0x118   :  { %1048 = vmatmul.msk.bf16.vlgmr.msra.gmra.mxu0 %vm38_vm1, %v1046_v29  ;;  %1049 = vmatmul.msk.bf16.vlgmr.msra.gmra.mxu1 %vm38_vm1, %v1046_v29 }
 0x11a   :  { %v258_v30 = vpop.f32.mrf.mxu2 }
 0x11b   :  { %v271_v31 = vpop.f32.mrf.mxu3  ;;  %v259_v32 = vadd.f32 %v258_v30, %v194_v16 }
 0x11c   :  { %v272_v33 = vadd.f32 %v271_v31, %v194_v16 }
 0x11d   :  { %v329_v34 = vmax.f32 %v259_v32, 0.0  ;;  %v284_v36 = vpop.f32.mrf.mxu0 }
 0x11e   :  { %v330_v35 = vmax.f32 %v272_v33, 0.0  ;;  %v297_v37 = vpop.f32.mrf.mxu1  ;;  %v285_v38 = vadd.f32 %v284_v36, %v194_v16 }
 0x11f   :  { %v298_v39 = vadd.f32 %v297_v37, %v194_v16  ;;  %v339_v40 = vpack.c.bf16 %v329_v34, %v329_v34 }
 0x120   :  { %v340_v41 = vpack.c.bf16 %v330_v35, %v330_v35  ;;  %v331_v42 = vmax.f32 %v285_v38, 0.0 }
 0x121   :  { %v332_v43 = vmax.f32 %v298_v39, 0.0  ;;  %v362_v44 = vsel %vm42_vm0, %v339_v40, 0 }
 0x122   :  { %v365_v45 = vsel %vm42_vm0, %v340_v41, 0  ;;  %v341_v46 = vpack.c.bf16 %v331_v42, %v331_v42  ;;  %v260_v48 = vpop.f32.mrf.mxu2  ;;  %412 = vmatpush.bf16.msra.mxu2 %v362_v44 }
 0x123   :  { %v342_v47 = vpack.c.bf16 %v332_v43, %v332_v43  ;;  %v273_v49 = vpop.f32.mrf.mxu3  ;;  %425 = vmatpush.bf16.msra.mxu3 %v365_v45 }
 0x124   :  { %v368_v50 = vsel %vm42_vm0, %v341_v46, 0 }
 0x125   :  { %v371_v51 = vsel %vm42_vm0, %v342_v47, 0  ;;  %1050 = vmatmul.msk.bf16.vlgmr.msra.gmra.mxu2 %vm38_vm1, %v1046_v29  ;;  %v286_v52 = vpop.f32.mrf.mxu0  ;;  %438 = vmatpush.bf16.msrb.mxu0 %v368_v50 }
 0x126   :  { %1051 = vmatmul.msk.bf16.vlgmr.msra.gmra.mxu3 %vm38_vm1, %v1046_v29  ;;  %v299_v53 = vpop.f32.mrf.mxu1  ;;  %451 = vmatpush.bf16.msrb.mxu1 %v371_v51  ;;  %v1203_v52 = vpop.permute.xlu1 %505 }
 0x128   :  { %1052 = vmatmul.msk.bf16.vlgmr.msrb.gmra.mxu0 %vm38_vm1, %v1046_v29 }
 0x129   :  { %1053 = vmatmul.msk.bf16.vlgmr.msrb.gmra.mxu1 %vm38_vm1, %v1046_v29 }
 0x12a   :  { %v310_v54 = vpop.f32.mrf.mxu2 }
 0x12b   :  { %v323_v55 = vpop.f32.mrf.mxu3  ;;  %v311_v56 = vadd.f32 %v310_v54, %v194_v16 }
 0x12c   :  { %v324_v57 = vadd.f32 %v323_v55, %v194_v16 }
 0x12d   :  { %v333_v58 = vmax.f32 %v311_v56, 0.0 }
 0x12e   :  { %v334_v59 = vmax.f32 %v324_v57, 0.0 }
 0x12f   :  { %v343_v60 = vpack.c.bf16 %v333_v58, %v333_v58 }
 0x130   :  { %v344_v61 = vpack.c.bf16 %v334_v59, %v334_v59 }
 0x131   :  { %v374_v62 = vsel %vm42_vm0, %v343_v60, 0 }
 0x132   :  { %v377_v63 = vsel %vm42_vm0, %v344_v61, 0  ;;  %464 = vmatpush.bf16.msrb.mxu2 %v374_v62  ;;  %v312_v0 = vpop.f32.mrf.mxu2 }
 0x133   :  { %477 = vmatpush.bf16.msrb.mxu3 %v377_v63  ;;  %v325_v1 = vpop.f32.mrf.mxu3 }
 0x135   :  { %1054 = vmatmul.msk.bf16.vlgmr.msrb.gmra.mxu2 %vm38_vm1, %v1046_v29 }
 0x136   :  { %1055 = vmatmul.msk.bf16.vlgmr.msrb.gmra.mxu3 %vm38_vm1, %v1046_v29 }
 0x195   :  { %v388_v3 = vpop.f32.mrf.mxu0  ;;  %v401_v4 = vpop.f32.mrf.mxu1 }
 0x196   :  { %v389_v5 = vadd.f32 %v388_v3, %v350_v2  ;;  %v402_v6 = vadd.f32 %v401_v4, %v350_v2 }
 0x198   :  { %v483_v7 = vmax.f32 %v389_v5, 0.0  ;;  %v484_v8 = vmax.f32 %v402_v6, 0.0 }
 0x19a   :  { %v493_v9 = vpack.c.bf16 %v483_v7, %v483_v7  ;;  %v494_v10 = vpack.c.bf16 %v484_v8, %v484_v8 }
 0x19c   :  { %v512_v11 = vsel %vm42_vm0, %v493_v9, 0  ;;  %v515_v12 = vsel %vm42_vm0, %v494_v10, 0 }
 0x19d   :  { %v390_v13 = vpop.f32.mrf.mxu0  ;;  %v403_v14 = vpop.f32.mrf.mxu1  ;;  %542 = vmatpush.bf16.msra.mxu0 %v512_v11  ;;  %555 = vmatpush.bf16.msra.mxu1 %v515_v12 }
 0x1a0   :  { %1058 = vmatmul.msk.bf16.vlgmr.msra.gmra.mxu0 %vm38_vm1, %v1056_v15  ;;  %1059 = vmatmul.msk.bf16.vlgmr.msra.gmra.mxu1 %vm38_vm1, %v1056_v15 }
 0x1a5   :  { %v440_v16 = vpop.f32.mrf.mxu0 }
 0x1a6   :  { %v453_v17 = vpop.f32.mrf.mxu1  ;;  %v441_v18 = vadd.f32 %v440_v16, %v350_v2 }
 0x1a7   :  { %v454_v19 = vadd.f32 %v453_v17, %v350_v2 }
 0x1a8   :  { %v414_v20 = vpop.f32.mrf.mxu2  ;;  %v487_v22 = vmax.f32 %v441_v18, 0.0 }
 0x1a9   :  { %v427_v21 = vpop.f32.mrf.mxu3  ;;  %v488_v23 = vmax.f32 %v454_v19, 0.0  ;;  %v415_v24 = vadd.f32 %v414_v20, %v350_v2 }
 0x1aa   :  { %v428_v25 = vadd.f32 %v427_v21, %v350_v2  ;;  %v497_v26 = vpack.c.bf16 %v487_v22, %v487_v22 }
 0x1ab   :  { %v498_v27 = vpack.c.bf16 %v488_v23, %v488_v23  ;;  %v485_v28 = vmax.f32 %v415_v24, 0.0 }
 0x1ac   :  { %v486_v29 = vmax.f32 %v428_v25, 0.0  ;;  %v524_v32 = vsel %vm42_vm0, %v497_v26, 0 }
 0x1ad   :  { %v495_v30 = vpack.c.bf16 %v485_v28, %v485_v28  ;;  %v527_v33 = vsel %vm42_vm0, %v498_v27, 0  ;;  %v442_v34 = vpop.f32.mrf.mxu0  ;;  %594 = vmatpush.bf16.msrb.mxu0 %v524_v32 }
 0x1ae   :  { %v496_v31 = vpack.c.bf16 %v486_v29, %v486_v29  ;;  %607 = vmatpush.bf16.msrb.mxu1 %v527_v33  ;;  %v455_v35 = vpop.f32.mrf.mxu1 }
 0x1af   :  { %v518_v36 = vsel %vm42_vm0, %v495_v30, 0 }
 0x1b0   :  { %v521_v37 = vsel %vm42_vm0, %v496_v31, 0  ;;  %v416_v38 = vpop.f32.mrf.mxu2  ;;  %568 = vmatpush.bf16.msra.mxu2 %v518_v36  ;;  %1062 = vmatmul.msk.bf16.vlgmr.msrb.gmra.mxu0 %vm38_vm1, %v1056_v15 }
 0x1b1   :  { %v429_v39 = vpop.f32.mrf.mxu3  ;;  %581 = vmatpush.bf16.msra.mxu3 %v521_v37  ;;  %1063 = vmatmul.msk.bf16.vlgmr.msrb.gmra.mxu1 %vm38_vm1, %v1056_v15 }
 0x1b3   :  { %1060 = vmatmul.msk.bf16.vlgmr.msra.gmra.mxu2 %vm38_vm1, %v1056_v15 }
 0x1b4   :  { %1061 = vmatmul.msk.bf16.vlgmr.msra.gmra.mxu3 %vm38_vm1, %v1056_v15 }
 0x1b8   :  { %v466_v40 = vpop.f32.mrf.mxu2 }
 0x1b9   :  { %v479_v41 = vpop.f32.mrf.mxu3  ;;  %v467_v42 = vadd.f32 %v466_v40, %v350_v2 }
 0x1ba   :  { %v480_v43 = vadd.f32 %v479_v41, %v350_v2 }
 0x1bb   :  { %v489_v44 = vmax.f32 %v467_v42, 0.0 }
 0x1bc   :  { %v490_v45 = vmax.f32 %v480_v43, 0.0 }
 0x1bd   :  { %v499_v46 = vpack.c.bf16 %v489_v44, %v489_v44 }
 0x1be   :  { %v500_v47 = vpack.c.bf16 %v490_v45, %v490_v45 }
 0x1bf   :  { %v530_v48 = vsel %vm42_vm0, %v499_v46, 0 }
 0x1c0   :  { %v533_v49 = vsel %vm42_vm0, %v500_v47, 0  ;;  %620 = vmatpush.bf16.msrb.mxu2 %v530_v48  ;;  %v468_v50 = vpop.f32.mrf.mxu2 }
 0x1c1   :  { %633 = vmatpush.bf16.msrb.mxu3 %v533_v49  ;;  %v481_v51 = vpop.f32.mrf.mxu3 }
 0x1c3   :  { %1064 = vmatmul.msk.bf16.vlgmr.msrb.gmra.mxu2 %vm38_vm1, %v1056_v15 }
 0x1c4   :  { %1065 = vmatmul.msk.bf16.vlgmr.msrb.gmra.mxu3 %vm38_vm1, %v1056_v15 }
 0x21d   :  { %v544_v53 = vpop.f32.mrf.mxu0  ;;  %v557_v54 = vpop.f32.mrf.mxu1 }
 0x21e   :  { %v545_v55 = vadd.f32 %v544_v53, %v1203_v52  ;;  %v558_v8 = vadd.f32 %v557_v54, %v1203_v52 }
 0x220   :  { %639 = vxpose.xlu2.b32.start.end [1/1] (short) %v545_v55, 128 }
 0x225   :  { %v546_v56 = vpop.f32.mrf.mxu0  ;;  %v559_v57 = vpop.f32.mrf.mxu1 }
 0x22d   :  { %v596_v58 = vpop.f32.mrf.mxu0 }
 0x22e   :  { %v597_v59 = vadd.f32 %v596_v58, %v1203_v52  ;;  %v609_v60 = vpop.f32.mrf.mxu1 }
 0x22f   :  { %v610_v10 = vadd.f32 %v609_v60, %v1203_v52 }
 0x230   :  { %767 = vxpose.xlu0.b32.start.end [1/1] (short) %v597_v59, 128 }
 0x235   :  { %v598_v0 = vpop.f32.mrf.mxu0 }
 0x236   :  { %v570_v61 = vpop.f32.mrf.mxu2  ;;  %v611_v1 = vpop.f32.mrf.mxu1 }
 0x237   :  { %v583_v62 = vpop.f32.mrf.mxu3  ;;  %v571_v9 = vadd.f32 %v570_v61, %v1203_v52 }
 0x238   :  { %v584_v63 = vadd.f32 %v583_v62, %v1203_v52 }
 0x23a   :  { %735 = vxpose.xlu1.b32.start.end [1/1] (short) %v584_v63, 128 }
 0x23e   :  { %v572_v2 = vpop.f32.mrf.mxu2 }
 0x23f   :  { %v585_v3 = vpop.f32.mrf.mxu3 }
 0x246   :  { %v622_v4 = vpop.f32.mrf.mxu2 }
 0x247   :  { %v1208_v5 = vpop.f32.mrf.mxu3  ;;  %v623_v34 = vadd.f32 %v622_v4, %v1203_v52 }
 0x248   :  { %v636_v40 = vadd.f32 %v1208_v5, %v1203_v52 }
 0x24e   :  { %v624_v7 = vpop.f32.mrf.mxu2 }
 0x24f   :  { %v637_v6 = vpop.f32.mrf.mxu3 }
 0x2a0   :  { %671 = vxpose.xlu2.b32.start.end [1/1] (short) %v558_v8, 128 }
 0x2b0   :  { %703 = vxpose.xlu0.b32.start.end [1/1] (short) %v571_v9, 128 }
 0x2b9   :  { %v655_v11 = vpop.trf.xlu2 }
 0x2ba   :  { %799 = vxpose.xlu1.b32.start.end [1/1] (short) %v610_v10, 128  ;;  %896 = vst.msk [vmem:[%s1731_s3] sm:$0xff] %vm895_vm2, %v655_v11 }
 0x2c1   :  { %v656_v12 = vpop.trf.xlu2 }
 0x2c2   :  { %897 = vst.msk [vmem:[%s1731_s3 + $0x8] sm:$0xff] %vm895_vm2, %v656_v12 }
 0x2c9   :  { %v657_v13 = vpop.trf.xlu2 }
 0x2ca   :  { %898 = vst.msk [vmem:[%s1731_s3 + $0x10] sm:$0xff] %vm895_vm2, %v657_v13 }
 0x2d1   :  { %v658_v14 = vpop.trf.xlu2 }
 0x2d2   :  { %899 = vst.msk [vmem:[%s1731_s3 + $0x18] sm:$0xff] %vm895_vm2, %v658_v14 }
 0x2d4   :  { %v783_v15 = vpop.trf.xlu0 }
 0x2d5   :  { %960 = vst.msk [vmem:[%s1731_s3 + $0x200] sm:$0xff] %vm895_vm2, %v783_v15 }
 0x2d9   :  { %v659_v16 = vpop.trf.xlu2 }
 0x2da   :  { %900 = vst.msk [vmem:[%s1731_s3 + $0x20] sm:$0xff] %vm895_vm2, %v659_v16 }
 0x2dc   :  { %v784_v17 = vpop.trf.xlu0 }
 0x2dd   :  { %961 = vst.msk [vmem:[%s1731_s3 + $0x208] sm:$0xff] %vm895_vm2, %v784_v17 }
 0x2de   :  { %v751_v39 = vpop.trf.xlu1 }
 0x2df   :  { %944 = vst.msk [vmem:[%s1731_s3 + $0x180] sm:$0xff] %vm895_vm2, %v751_v39 }
 0x2e1   :  { %v660_v18 = vpop.trf.xlu2 }
 0x2e2   :  { %901 = vst.msk [vmem:[%s1731_s3 + $0x28] sm:$0xff] %vm895_vm2, %v660_v18 }
 0x2e4   :  { %v785_v19 = vpop.trf.xlu0 }
 0x2e5   :  { %962 = vst.msk [vmem:[%s1731_s3 + $0x210] sm:$0xff] %vm895_vm2, %v785_v19 }
 0x2e6   :  { %v752_v43 = vpop.trf.xlu1 }
 0x2e7   :  { %945 = vst.msk [vmem:[%s1731_s3 + $0x188] sm:$0xff] %vm895_vm2, %v752_v43 }
 0x2e9   :  { %v661_v20 = vpop.trf.xlu2 }
 0x2ea   :  { %902 = vst.msk [vmem:[%s1731_s3 + $0x30] sm:$0xff] %vm895_vm2, %v661_v20 }
 0x2ec   :  { %v786_v21 = vpop.trf.xlu0 }
 0x2ed   :  { %963 = vst.msk [vmem:[%s1731_s3 + $0x218] sm:$0xff] %vm895_vm2, %v786_v21 }
 0x2ee   :  { %v753_v46 = vpop.trf.xlu1 }
 0x2ef   :  { %946 = vst.msk [vmem:[%s1731_s3 + $0x190] sm:$0xff] %vm895_vm2, %v753_v46 }
 0x2f1   :  { %v662_v22 = vpop.trf.xlu2 }
 0x2f2   :  { %903 = vst.msk [vmem:[%s1731_s3 + $0x38] sm:$0xff] %vm895_vm2, %v662_v22 }
 0x2f4   :  { %v787_v23 = vpop.trf.xlu0 }
 0x2f5   :  { %964 = vst.msk [vmem:[%s1731_s3 + $0x220] sm:$0xff] %vm895_vm2, %v787_v23 }
 0x2f6   :  { %v754_v49 = vpop.trf.xlu1 }
 0x2f7   :  { %947 = vst.msk [vmem:[%s1731_s3 + $0x198] sm:$0xff] %vm895_vm2, %v754_v49 }
 0x2f9   :  { %v663_v24 = vpop.trf.xlu2 }
 0x2fa   :  { %904 = vst.msk [vmem:[%s1731_s3 + $0x40] sm:$0xff] %vm895_vm2, %v663_v24 }
 0x2fc   :  { %v788_v25 = vpop.trf.xlu0 }
 0x2fd   :  { %965 = vst.msk [vmem:[%s1731_s3 + $0x228] sm:$0xff] %vm895_vm2, %v788_v25 }
 0x2fe   :  { %v755_v52 = vpop.trf.xlu1 }
 0x2ff   :  { %948 = vst.msk [vmem:[%s1731_s3 + $0x1a0] sm:$0xff] %vm895_vm2, %v755_v52 }
 0x301   :  { %v664_v26 = vpop.trf.xlu2 }
 0x302   :  { %905 = vst.msk [vmem:[%s1731_s3 + $0x48] sm:$0xff] %vm895_vm2, %v664_v26 }
 0x304   :  { %v789_v27 = vpop.trf.xlu0 }
 0x305   :  { %966 = vst.msk [vmem:[%s1731_s3 + $0x230] sm:$0xff] %vm895_vm2, %v789_v27 }
 0x306   :  { %v756_v55 = vpop.trf.xlu1 }
 0x307   :  { %949 = vst.msk [vmem:[%s1731_s3 + $0x1a8] sm:$0xff] %vm895_vm2, %v756_v55 }
 0x309   :  { %v665_v28 = vpop.trf.xlu2 }
 0x30a   :  { %906 = vst.msk [vmem:[%s1731_s3 + $0x50] sm:$0xff] %vm895_vm2, %v665_v28 }
 0x30c   :  { %v790_v29 = vpop.trf.xlu0 }
 0x30d   :  { %967 = vst.msk [vmem:[%s1731_s3 + $0x238] sm:$0xff] %vm895_vm2, %v790_v29 }
 0x30e   :  { %v757_v58 = vpop.trf.xlu1 }
 0x30f   :  { %950 = vst.msk [vmem:[%s1731_s3 + $0x1b0] sm:$0xff] %vm895_vm2, %v757_v58 }
 0x311   :  { %v666_v30 = vpop.trf.xlu2 }
 0x312   :  { %907 = vst.msk [vmem:[%s1731_s3 + $0x58] sm:$0xff] %vm895_vm2, %v666_v30 }
 0x314   :  { %v791_v31 = vpop.trf.xlu0 }
 0x315   :  { %968 = vst.msk [vmem:[%s1731_s3 + $0x240] sm:$0xff] %vm895_vm2, %v791_v31 }
 0x316   :  { %v758_v61 = vpop.trf.xlu1 }
 0x317   :  { %951 = vst.msk [vmem:[%s1731_s3 + $0x1b8] sm:$0xff] %vm895_vm2, %v758_v61 }
 0x319   :  { %v667_v32 = vpop.trf.xlu2 }
 0x31a   :  { %908 = vst.msk [vmem:[%s1731_s3 + $0x60] sm:$0xff] %vm895_vm2, %v667_v32 }
 0x31c   :  { %v792_v33 = vpop.trf.xlu0 }
 0x31d   :  { %969 = vst.msk [vmem:[%s1731_s3 + $0x248] sm:$0xff] %vm895_vm2, %v792_v33 }
 0x31e   :  { %v759_v0 = vpop.trf.xlu1 }
 0x31f   :  { %952 = vst.msk [vmem:[%s1731_s3 + $0x1c0] sm:$0xff] %vm895_vm2, %v759_v0 }
 0x320   :  { %831 = vxpose.xlu2.b32.start.end [1/1] (short) %v623_v34, 128 }
 0x321   :  { %v668_v35 = vpop.trf.xlu2 }
 0x322   :  { %909 = vst.msk [vmem:[%s1731_s3 + $0x68] sm:$0xff] %vm895_vm2, %v668_v35 }
 0x324   :  { %v793_v36 = vpop.trf.xlu0 }
 0x325   :  { %970 = vst.msk [vmem:[%s1731_s3 + $0x250] sm:$0xff] %vm895_vm2, %v793_v36 }
 0x326   :  { %v760_v3 = vpop.trf.xlu1 }
 0x327   :  { %953 = vst.msk [vmem:[%s1731_s3 + $0x1c8] sm:$0xff] %vm895_vm2, %v760_v3 }
 0x329   :  { %v669_v37 = vpop.trf.xlu2 }
 0x32a   :  { %910 = vst.msk [vmem:[%s1731_s3 + $0x70] sm:$0xff] %vm895_vm2, %v669_v37 }
 0x32c   :  { %v794_v38 = vpop.trf.xlu0 }
 0x32d   :  { %971 = vst.msk [vmem:[%s1731_s3 + $0x258] sm:$0xff] %vm895_vm2, %v794_v38 }
 0x32e   :  { %v761_v6 = vpop.trf.xlu1 }
 0x32f   :  { %954 = vst.msk [vmem:[%s1731_s3 + $0x1d0] sm:$0xff] %vm895_vm2, %v761_v6 }
 0x330   :  { %863 = vxpose.xlu0.b32.start.end [1/1] (short) %v636_v40, 128 }
 0x331   :  { %v670_v41 = vpop.trf.xlu2 }
 0x332   :  { %911 = vst.msk [vmem:[%s1731_s3 + $0x78] sm:$0xff] %vm895_vm2, %v670_v41 }
 0x334   :  { %v795_v42 = vpop.trf.xlu0 }
 0x335   :  { %972 = vst.msk [vmem:[%s1731_s3 + $0x260] sm:$0xff] %vm895_vm2, %v795_v42 }
 0x336   :  { %v762_v9 = vpop.trf.xlu1 }
 0x337   :  { %955 = vst.msk [vmem:[%s1731_s3 + $0x1d8] sm:$0xff] %vm895_vm2, %v762_v9 }
 0x339   :  { %v687_v44 = vpop.trf.xlu2 }
 0x33a   :  { %912 = vst.msk [vmem:[%s1731_s3 + $0x80] sm:$0xff] %vm895_vm2, %v687_v44 }
 0x33c   :  { %v796_v45 = vpop.trf.xlu0 }
 0x33d   :  { %973 = vst.msk [vmem:[%s1731_s3 + $0x268] sm:$0xff] %vm895_vm2, %v796_v45 }
 0x33e   :  { %v763_v12 = vpop.trf.xlu1 }
 0x33f   :  { %956 = vst.msk [vmem:[%s1731_s3 + $0x1e0] sm:$0xff] %vm895_vm2, %v763_v12 }
 0x341   :  { %v688_v47 = vpop.trf.xlu2 }
 0x342   :  { %913 = vst.msk [vmem:[%s1731_s3 + $0x88] sm:$0xff] %vm895_vm2, %v688_v47 }
 0x344   :  { %v797_v48 = vpop.trf.xlu0 }
 0x345   :  { %974 = vst.msk [vmem:[%s1731_s3 + $0x270] sm:$0xff] %vm895_vm2, %v797_v48 }
 0x346   :  { %v764_v15 = vpop.trf.xlu1 }
 0x347   :  { %957 = vst.msk [vmem:[%s1731_s3 + $0x1e8] sm:$0xff] %vm895_vm2, %v764_v15 }
 0x349   :  { %v689_v50 = vpop.trf.xlu2 }
 0x34a   :  { %914 = vst.msk [vmem:[%s1731_s3 + $0x90] sm:$0xff] %vm895_vm2, %v689_v50 }
 0x34c   :  { %v798_v51 = vpop.trf.xlu0 }
 0x34d   :  { %975 = vst.msk [vmem:[%s1731_s3 + $0x278] sm:$0xff] %vm895_vm2, %v798_v51 }
 0x34e   :  { %v765_v18 = vpop.trf.xlu1 }
 0x34f   :  { %958 = vst.msk [vmem:[%s1731_s3 + $0x1f0] sm:$0xff] %vm895_vm2, %v765_v18 }
 0x351   :  { %v690_v53 = vpop.trf.xlu2 }
 0x352   :  { %915 = vst.msk [vmem:[%s1731_s3 + $0x98] sm:$0xff] %vm895_vm2, %v690_v53 }
 0x354   :  { %v719_v54 = vpop.trf.xlu0 }
 0x355   :  { %928 = vst.msk [vmem:[%s1731_s3 + $0x100] sm:$0xff] %vm895_vm2, %v719_v54 }
 0x356   :  { %v766_v21 = vpop.trf.xlu1 }
 0x357   :  { %959 = vst.msk [vmem:[%s1731_s3 + $0x1f8] sm:$0xff] %vm895_vm2, %v766_v21 }
 0x359   :  { %v691_v56 = vpop.trf.xlu2 }
 0x35a   :  { %916 = vst.msk [vmem:[%s1731_s3 + $0xa0] sm:$0xff] %vm895_vm2, %v691_v56 }
 0x35c   :  { %v720_v57 = vpop.trf.xlu0 }
 0x35d   :  { %929 = vst.msk [vmem:[%s1731_s3 + $0x108] sm:$0xff] %vm895_vm2, %v720_v57 }
 0x35e   :  { %v815_v24 = vpop.trf.xlu1 }
 0x35f   :  { %976 = vst.msk [vmem:[%s1731_s3 + $0x280] sm:$0xff] %vm895_vm2, %v815_v24 }
 0x361   :  { %v692_v59 = vpop.trf.xlu2 }
 0x362   :  { %917 = vst.msk [vmem:[%s1731_s3 + $0xa8] sm:$0xff] %vm895_vm2, %v692_v59 }
 0x364   :  { %v721_v60 = vpop.trf.xlu0 }
 0x365   :  { %930 = vst.msk [vmem:[%s1731_s3 + $0x110] sm:$0xff] %vm895_vm2, %v721_v60 }
 0x366   :  { %v816_v27 = vpop.trf.xlu1 }
 0x367   :  { %977 = vst.msk [vmem:[%s1731_s3 + $0x288] sm:$0xff] %vm895_vm2, %v816_v27 }
 0x369   :  { %v693_v62 = vpop.trf.xlu2 }
 0x36a   :  { %918 = vst.msk [vmem:[%s1731_s3 + $0xb0] sm:$0xff] %vm895_vm2, %v693_v62 }
 0x36c   :  { %v722_v63 = vpop.trf.xlu0 }
 0x36d   :  { %931 = vst.msk [vmem:[%s1731_s3 + $0x118] sm:$0xff] %vm895_vm2, %v722_v63 }
 0x36e   :  { %v817_v30 = vpop.trf.xlu1 }
 0x36f   :  { %978 = vst.msk [vmem:[%s1731_s3 + $0x290] sm:$0xff] %vm895_vm2, %v817_v30 }
 0x371   :  { %v694_v1 = vpop.trf.xlu2 }
 0x372   :  { %919 = vst.msk [vmem:[%s1731_s3 + $0xb8] sm:$0xff] %vm895_vm2, %v694_v1 }
 0x374   :  { %v723_v2 = vpop.trf.xlu0 }
 0x375   :  { %932 = vst.msk [vmem:[%s1731_s3 + $0x120] sm:$0xff] %vm895_vm2, %v723_v2 }
 0x376   :  { %v818_v33 = vpop.trf.xlu1 }
 0x377   :  { %979 = vst.msk [vmem:[%s1731_s3 + $0x298] sm:$0xff] %vm895_vm2, %v818_v33 }
 0x379   :  { %v695_v4 = vpop.trf.xlu2 }
 0x37a   :  { %920 = vst.msk [vmem:[%s1731_s3 + $0xc0] sm:$0xff] %vm895_vm2, %v695_v4 }
 0x37c   :  { %v724_v5 = vpop.trf.xlu0 }
 0x37d   :  { %933 = vst.msk [vmem:[%s1731_s3 + $0x128] sm:$0xff] %vm895_vm2, %v724_v5 }
 0x37e   :  { %v819_v36 = vpop.trf.xlu1 }
 0x37f   :  { %980 = vst.msk [vmem:[%s1731_s3 + $0x2a0] sm:$0xff] %vm895_vm2, %v819_v36 }
 0x381   :  { %v696_v7 = vpop.trf.xlu2 }
 0x382   :  { %921 = vst.msk [vmem:[%s1731_s3 + $0xc8] sm:$0xff] %vm895_vm2, %v696_v7 }
 0x384   :  { %v725_v8 = vpop.trf.xlu0 }
 0x385   :  { %934 = vst.msk [vmem:[%s1731_s3 + $0x130] sm:$0xff] %vm895_vm2, %v725_v8 }
 0x386   :  { %v820_v39 = vpop.trf.xlu1 }
 0x387   :  { %981 = vst.msk [vmem:[%s1731_s3 + $0x2a8] sm:$0xff] %vm895_vm2, %v820_v39 }
 0x389   :  { %v697_v10 = vpop.trf.xlu2 }
 0x38a   :  { %922 = vst.msk [vmem:[%s1731_s3 + $0xd0] sm:$0xff] %vm895_vm2, %v697_v10 }
 0x38c   :  { %v726_v11 = vpop.trf.xlu0 }
 0x38d   :  { %935 = vst.msk [vmem:[%s1731_s3 + $0x138] sm:$0xff] %vm895_vm2, %v726_v11 }
 0x38e   :  { %v821_v42 = vpop.trf.xlu1 }
 0x38f   :  { %982 = vst.msk [vmem:[%s1731_s3 + $0x2b0] sm:$0xff] %vm895_vm2, %v821_v42 }
 0x391   :  { %v698_v13 = vpop.trf.xlu2 }
 0x392   :  { %923 = vst.msk [vmem:[%s1731_s3 + $0xd8] sm:$0xff] %vm895_vm2, %v698_v13 }
 0x394   :  { %v727_v14 = vpop.trf.xlu0 }
 0x395   :  { %936 = vst.msk [vmem:[%s1731_s3 + $0x140] sm:$0xff] %vm895_vm2, %v727_v14 }
 0x396   :  { %v822_v45 = vpop.trf.xlu1 }
 0x397   :  { %983 = vst.msk [vmem:[%s1731_s3 + $0x2b8] sm:$0xff] %vm895_vm2, %v822_v45 }
 0x399   :  { %v699_v16 = vpop.trf.xlu2 }
 0x39a   :  { %924 = vst.msk [vmem:[%s1731_s3 + $0xe0] sm:$0xff] %vm895_vm2, %v699_v16 }
 0x39c   :  { %v728_v17 = vpop.trf.xlu0 }
 0x39d   :  { %937 = vst.msk [vmem:[%s1731_s3 + $0x148] sm:$0xff] %vm895_vm2, %v728_v17 }
 0x39e   :  { %v823_v48 = vpop.trf.xlu1 }
 0x39f   :  { %984 = vst.msk [vmem:[%s1731_s3 + $0x2c0] sm:$0xff] %vm895_vm2, %v823_v48 }
 0x3a1   :  { %v700_v19 = vpop.trf.xlu2 }
 0x3a2   :  { %925 = vst.msk [vmem:[%s1731_s3 + $0xe8] sm:$0xff] %vm895_vm2, %v700_v19 }
 0x3a4   :  { %v729_v20 = vpop.trf.xlu0 }
 0x3a5   :  { %938 = vst.msk [vmem:[%s1731_s3 + $0x150] sm:$0xff] %vm895_vm2, %v729_v20 }
 0x3a6   :  { %v824_v51 = vpop.trf.xlu1 }
 0x3a7   :  { %985 = vst.msk [vmem:[%s1731_s3 + $0x2c8] sm:$0xff] %vm895_vm2, %v824_v51 }
 0x3a9   :  { %v701_v22 = vpop.trf.xlu2 }
 0x3aa   :  { %926 = vst.msk [vmem:[%s1731_s3 + $0xf0] sm:$0xff] %vm895_vm2, %v701_v22 }
 0x3ac   :  { %v730_v23 = vpop.trf.xlu0 }
 0x3ad   :  { %939 = vst.msk [vmem:[%s1731_s3 + $0x158] sm:$0xff] %vm895_vm2, %v730_v23 }
 0x3ae   :  { %v825_v54 = vpop.trf.xlu1 }
 0x3af   :  { %986 = vst.msk [vmem:[%s1731_s3 + $0x2d0] sm:$0xff] %vm895_vm2, %v825_v54 }
 0x3b1   :  { %v702_v25 = vpop.trf.xlu2 }
 0x3b2   :  { %927 = vst.msk [vmem:[%s1731_s3 + $0xf8] sm:$0xff] %vm895_vm2, %v702_v25 }
 0x3b4   :  { %v731_v26 = vpop.trf.xlu0 }
 0x3b5   :  { %940 = vst.msk [vmem:[%s1731_s3 + $0x160] sm:$0xff] %vm895_vm2, %v731_v26 }
 0x3b6   :  { %v826_v57 = vpop.trf.xlu1 }
 0x3b7   :  { %987 = vst.msk [vmem:[%s1731_s3 + $0x2d8] sm:$0xff] %vm895_vm2, %v826_v57 }
 0x3b9   :  { %v847_v28 = vpop.trf.xlu2 }
 0x3ba   :  { %992 = vst.msk [vmem:[%s1731_s3 + $0x300] sm:$0xff] %vm895_vm2, %v847_v28 }
 0x3bc   :  { %v732_v29 = vpop.trf.xlu0 }
 0x3bd   :  { %941 = vst.msk [vmem:[%s1731_s3 + $0x168] sm:$0xff] %vm895_vm2, %v732_v29 }
 0x3be   :  { %v827_v60 = vpop.trf.xlu1 }
 0x3bf   :  { %988 = vst.msk [vmem:[%s1731_s3 + $0x2e0] sm:$0xff] %vm895_vm2, %v827_v60 }
 0x3c1   :  { %v848_v31 = vpop.trf.xlu2 }
 0x3c2   :  { %993 = vst.msk [vmem:[%s1731_s3 + $0x308] sm:$0xff] %vm895_vm2, %v848_v31 }
 0x3c4   :  { %v733_v32 = vpop.trf.xlu0 }
 0x3c5   :  { %942 = vst.msk [vmem:[%s1731_s3 + $0x170] sm:$0xff] %vm895_vm2, %v733_v32 }
 0x3c6   :  { %v828_v63 = vpop.trf.xlu1 }
 0x3c7   :  { %989 = vst.msk [vmem:[%s1731_s3 + $0x2e8] sm:$0xff] %vm895_vm2, %v828_v63 }
 0x3c9   :  { %v849_v34 = vpop.trf.xlu2 }
 0x3ca   :  { %994 = vst.msk [vmem:[%s1731_s3 + $0x310] sm:$0xff] %vm895_vm2, %v849_v34 }
 0x3cc   :  { %v734_v35 = vpop.trf.xlu0 }
 0x3cd   :  { %943 = vst.msk [vmem:[%s1731_s3 + $0x178] sm:$0xff] %vm895_vm2, %v734_v35 }
 0x3ce   :  { %v829_v2 = vpop.trf.xlu1 }
 0x3cf   :  { %990 = vst.msk [vmem:[%s1731_s3 + $0x2f0] sm:$0xff] %vm895_vm2, %v829_v2 }
 0x3d1   :  { %v850_v37 = vpop.trf.xlu2 }
 0x3d2   :  { %995 = vst.msk [vmem:[%s1731_s3 + $0x318] sm:$0xff] %vm895_vm2, %v850_v37 }
 0x3d4   :  { %v879_v38 = vpop.trf.xlu0 }
 0x3d5   :  { %1008 = vst.msk [vmem:[%s1731_s3 + $0x380] sm:$0xff] %vm895_vm2, %v879_v38 }
 0x3d6   :  { %v830_v5 = vpop.trf.xlu1 }
 0x3d7   :  { %991 = vst.msk [vmem:[%s1731_s3 + $0x2f8] sm:$0xff] %vm895_vm2, %v830_v5 }
 0x3d9   :  { %v851_v40 = vpop.trf.xlu2 }
 0x3da   :  { %996 = vst.msk [vmem:[%s1731_s3 + $0x320] sm:$0xff] %vm895_vm2, %v851_v40 }
 0x3dc   :  { %v880_v41 = vpop.trf.xlu0 }
 0x3dd   :  { %1009 = vst.msk [vmem:[%s1731_s3 + $0x388] sm:$0xff] %vm895_vm2, %v880_v41 }
 0x3e1   :  { %v852_v43 = vpop.trf.xlu2 }
 0x3e2   :  { %997 = vst.msk [vmem:[%s1731_s3 + $0x328] sm:$0xff] %vm895_vm2, %v852_v43 }
 0x3e4   :  { %v881_v44 = vpop.trf.xlu0 }
 0x3e5   :  { %1010 = vst.msk [vmem:[%s1731_s3 + $0x390] sm:$0xff] %vm895_vm2, %v881_v44 }
 0x3e9   :  { %v853_v46 = vpop.trf.xlu2 }
 0x3ea   :  { %998 = vst.msk [vmem:[%s1731_s3 + $0x330] sm:$0xff] %vm895_vm2, %v853_v46 }
 0x3ec   :  { %v882_v47 = vpop.trf.xlu0 }
 0x3ed   :  { %1011 = vst.msk [vmem:[%s1731_s3 + $0x398] sm:$0xff] %vm895_vm2, %v882_v47 }
 0x3f1   :  { %v854_v49 = vpop.trf.xlu2 }
 0x3f2   :  { %999 = vst.msk [vmem:[%s1731_s3 + $0x338] sm:$0xff] %vm895_vm2, %v854_v49 }
 0x3f4   :  { %v883_v50 = vpop.trf.xlu0 }
 0x3f5   :  { %1012 = vst.msk [vmem:[%s1731_s3 + $0x3a0] sm:$0xff] %vm895_vm2, %v883_v50 }
 0x3f9   :  { %v855_v52 = vpop.trf.xlu2 }
 0x3fa   :  { %1000 = vst.msk [vmem:[%s1731_s3 + $0x340] sm:$0xff] %vm895_vm2, %v855_v52 }
 0x3fc   :  { %v884_v53 = vpop.trf.xlu0 }
 0x3fd   :  { %1013 = vst.msk [vmem:[%s1731_s3 + $0x3a8] sm:$0xff] %vm895_vm2, %v884_v53 }
 0x401   :  { %v856_v55 = vpop.trf.xlu2 }
 0x402   :  { %1001 = vst.msk [vmem:[%s1731_s3 + $0x348] sm:$0xff] %vm895_vm2, %v856_v55 }
 0x404   :  { %v885_v56 = vpop.trf.xlu0 }
 0x405   :  { %1014 = vst.msk [vmem:[%s1731_s3 + $0x3b0] sm:$0xff] %vm895_vm2, %v885_v56 }
 0x409   :  { %v857_v58 = vpop.trf.xlu2 }
 0x40a   :  { %1002 = vst.msk [vmem:[%s1731_s3 + $0x350] sm:$0xff] %vm895_vm2, %v857_v58 }
 0x40c   :  { %v886_v59 = vpop.trf.xlu0 }
 0x40d   :  { %1015 = vst.msk [vmem:[%s1731_s3 + $0x3b8] sm:$0xff] %vm895_vm2, %v886_v59 }
 0x411   :  { %v858_v61 = vpop.trf.xlu2 }
 0x412   :  { %1003 = vst.msk [vmem:[%s1731_s3 + $0x358] sm:$0xff] %vm895_vm2, %v858_v61 }
 0x414   :  { %v887_v62 = vpop.trf.xlu0 }
 0x415   :  { %1016 = vst.msk [vmem:[%s1731_s3 + $0x3c0] sm:$0xff] %vm895_vm2, %v887_v62 }
 0x419   :  { %v859_v0 = vpop.trf.xlu2 }
 0x41a   :  { %1004 = vst.msk [vmem:[%s1731_s3 + $0x360] sm:$0xff] %vm895_vm2, %v859_v0 }
 0x41c   :  { %v888_v1 = vpop.trf.xlu0 }
 0x41d   :  { %1017 = vst.msk [vmem:[%s1731_s3 + $0x3c8] sm:$0xff] %vm895_vm2, %v888_v1 }
 0x421   :  { %v860_v3 = vpop.trf.xlu2 }
 0x422   :  { %1005 = vst.msk [vmem:[%s1731_s3 + $0x368] sm:$0xff] %vm895_vm2, %v860_v3 }
 0x424   :  { %v889_v4 = vpop.trf.xlu0 }
 0x425   :  { %1018 = vst.msk [vmem:[%s1731_s3 + $0x3d0] sm:$0xff] %vm895_vm2, %v889_v4 }
 0x429   :  { %v861_v6 = vpop.trf.xlu2 }
 0x42a   :  { %1006 = vst.msk [vmem:[%s1731_s3 + $0x370] sm:$0xff] %vm895_vm2, %v861_v6 }
 0x42c   :  { %v890_v7 = vpop.trf.xlu0 }
 0x42d   :  { %1019 = vst.msk [vmem:[%s1731_s3 + $0x3d8] sm:$0xff] %vm895_vm2, %v890_v7 }
 0x431   :  { %v862_v8 = vpop.trf.xlu2 }
 0x432   :  { %1007 = vst.msk [vmem:[%s1731_s3 + $0x378] sm:$0xff] %vm895_vm2, %v862_v8 }
 0x434   :  { %v891_v9 = vpop.trf.xlu0 }
 0x435   :  { %1020 = vst.msk [vmem:[%s1731_s3 + $0x3e0] sm:$0xff] %vm895_vm2, %v891_v9 }
 0x43c   :  { %v892_v10 = vpop.trf.xlu0 }
 0x43d   :  { %1021 = vst.msk [vmem:[%s1731_s3 + $0x3e8] sm:$0xff] %vm895_vm2, %v892_v10 }
 0x444   :  { %v893_v11 = vpop.trf.xlu0 }
 0x445   :  { %1022 = vst.msk [vmem:[%s1731_s3 + $0x3f0] sm:$0xff] %vm895_vm2, %v893_v11 }
 0x44c   :  { %v894_v12 = vpop.trf.xlu0 }
 0x44d   :  { %1023 = vst.msk [vmem:[%s1731_s3 + $0x3f8] sm:$0xff] %vm895_vm2, %v894_v12 }

</bundles_post_ra>
